<compile_context>
chip_gen: v7x
topology: tpu7x:2x2x1
jax: 0.10.0
libtpu: 0.0.40
codegen_flags: <defaults>
</compile_context>

<pallas_src>
import jax
import jax.numpy as jnp
from jax import lax
from jax.experimental import pallas as pl
from jax.experimental.pallas import tpu as pltpu


# --------------------------------------------------------------------------
# Kernel 1: masked mean-pool of tag token embeddings -> (C, D)
#   tag_embedding = sum_t(emb * mask) / sum_t(mask)
# --------------------------------------------------------------------------
def _tag_pool_kernel(emb_ref, mask_ref, out_ref):
    emb = emb_ref[...]                              # (C, T, D)
    m = mask_ref[...]                               # (C, T)
    num = jnp.sum(emb * m[:, :, None], axis=1)      # (C, D)
    den = jnp.sum(m, axis=1, keepdims=True)         # (C, 1)
    out_ref[...] = (num / den).astype(out_ref.dtype)


# --------------------------------------------------------------------------
# Kernel 2: per-batch masked attention + class-weighted readout -> (1, 1, C)
#   tc_ref rows [0, C)  = tag_embedding   (C, D)
#   tc_ref rows [C, 2C) = class_weight    (C, D)
# --------------------------------------------------------------------------
def _mabert_attn_kernel(tf_ref, mask_ref, tc_ref, pred_ref):
    tf = tf_ref[0]                                  # (L, D)
    mask = mask_ref[0]                              # (L, 1) float, 1 = valid token
    tc = tc_ref[...]                                # (2C, D)

    # One fused MXU call: contract D of token_feat with D of [tag_emb; class_weight].
    s = lax.dot_general(tf, tc,
                        dimension_numbers=(((1,), (1,)), ((), ())),
                        preferred_element_type=jnp.float32)      # (L, 2C)
    C = s.shape[1] // 2
    scores = s[:, :C]                               # (L, C) == token_feat @ tag_embedding.T
    wproj = s[:, C:]                                # (L, C) == token_feat @ class_weight.T

    # masked softmax over the token axis L (axis 0), per class column.
    masked = jnp.where(mask > 0, scores, -jnp.inf)  # (L, C)
    mmax = jnp.max(masked, axis=0, keepdims=True)   # (1, C)
    p = jnp.exp(masked - mmax)                      # (L, C)
    denom = jnp.sum(p, axis=0, keepdims=True)       # (1, C)
    attn = p / denom                                # (L, C), softmax over L

    # pred[c] = sum_l attn[l, c] * wproj[l, c]  (== sum_d (att @ token_feat * class_weight))
    pred = jnp.sum(attn * wproj, axis=0, keepdims=True)          # (1, C)
    pred_ref[0] = pred.astype(pred_ref.dtype)


# --------------------------------------------------------------------------
# Wrapper
# --------------------------------------------------------------------------
def mabert_forward(token_feat, attention_mask, tag_emb_tokens, tag_mask, class_weight):
    """MABert forward (everything after the BERT encoder).

    token_feat:     (B, L, D) f32  - bert(...)[0]
    attention_mask: (B, L)    f32  - 1 for valid tokens, 0 for padding
    tag_emb_tokens: (C, T, D) f32  - embed(encoded_tag)
    tag_mask:       (C, T)    f32
    class_weight:   (C, D)    f32
    returns pred:   (B, C)    f32
    """
    B, L, D = token_feat.shape
    C = class_weight.shape[0]

    # 1) Tag-embedding masked mean pooling (single full-block kernel, no grid).
    tag_embedding = pl.pallas_call(
        _tag_pool_kernel,
        out_shape=jax.ShapeDtypeStruct((C, D), jnp.float32),
    )(tag_emb_tokens.astype(jnp.float32), tag_mask.astype(jnp.float32))

    # 2) Fuse both projection operands into one (2C, D) matrix (stays VMEM-resident).
    tc = jnp.concatenate([tag_embedding, class_weight.astype(jnp.float32)], axis=0)  # (2C, D)

    # Mask laid out as (B, L, 1) so the kernel block's last two dims are full-extent.
    mask3 = attention_mask.astype(jnp.float32)[:, :, None]                            # (B, L, 1)

    pred3 = pl.pallas_call(
        _mabert_attn_kernel,
        out_shape=jax.ShapeDtypeStruct((B, 1, C), jnp.float32),
        grid_spec=pltpu.PrefetchScalarGridSpec(
            num_scalar_prefetch=0,
            grid=(B,),
            in_specs=[
                pl.BlockSpec((1, L, D), lambda b: (b, 0, 0)),   # token_feat slice
                pl.BlockSpec((1, L, 1), lambda b: (b, 0, 0)),   # attention mask slice
                pl.BlockSpec((2 * C, D), lambda b: (0, 0)),     # resident tag/class operand
            ],
            out_specs=pl.BlockSpec((1, 1, C), lambda b: (b, 0, 0)),
        ),
        compiler_params=pltpu.CompilerParams(
            dimension_semantics=("parallel",)),
    )(token_feat.astype(jnp.float32), mask3, tc)

    return pred3[:, 0, :]                                        # (B, C)


# --------------------------------------------------------------------------
# Demo / correctness check
# --------------------------------------------------------------------------
if __name__ == "__main__":
    key = jax.random.PRNGKey(0)
    k1, k2, k3, k4 = jax.random.split(key, 4)

    B, L, D = 2, 16, 128     # batch, seq len, hidden (real BERT D=768; 128 keeps lanes dense)
    C, T = 8, 4              # num_classes, tokens per tag label
    V = 32                   # demo vocab size

    # TODO(synk): the BERT encoder itself has no compact Pallas equivalent here;
    # token_feat stands in for bert(ids, token_type_ids, attention_mask)[0].
    token_feat = jax.random.normal(k1, (B, L, D), dtype=jnp.float32)

    # attention_mask: batch 0 fully valid, batch 1 has 4 padded tokens at the end.
    attention_mask = jnp.ones((B, L), dtype=jnp.float32)
    attention_mask = attention_mask.at[1, L - 4:].set(0.0)

    # bert.get_input_embeddings() stand-in: random table, plain JAX gather in the wrapper.
    embed_table = jax.random.normal(k2, (V, D), dtype=jnp.float32)
    encoded_tag = jax.random.randint(k3, (C, T), 0, V)
    tag_mask = jnp.ones((C, T), dtype=jnp.float32)
    tag_mask = tag_mask.at[: C // 2, T - 1].set(0.0)             # some tags are shorter
    tag_emb_tokens = embed_table[encoded_tag]                    # (C, T, D)

    # class_weight ~ U(0, 1) as in the module.
    class_weight = jax.random.uniform(k4, (C, D), dtype=jnp.float32)

    pred = mabert_forward(token_feat, attention_mask, tag_emb_tokens, tag_mask, class_weight)
    pred = jax.block_until_ready(pred)

    # Pure-JAX reference mirroring the original PyTorch op order.
    tag_embedding = jnp.sum(tag_emb_tokens * tag_mask[..., None], axis=1) / \
        jnp.sum(tag_mask, axis=1, keepdims=True)                  # (C, D)
    att = jnp.matmul(token_feat, tag_embedding.T)                 # (B, L, C)
    att = jnp.transpose(att, (0, 2, 1))                           # (B, C, L)
    att = jnp.where(attention_mask[:, None, :] > 0, att, -jnp.inf)
    att = jax.nn.softmax(att, axis=-1)
    att_out = jnp.matmul(att, token_feat)                         # (B, C, D)
    att_out = att_out * class_weight                              # broadcast (C, D)
    ref = jnp.sum(att_out, axis=-1)                               # (B, C)

    assert pred.shape == (B, C)
    assert jnp.allclose(pred, ref, atol=1e-3, rtol=1e-3)

    print("KERNEL_OK")
</pallas_src>

<mosaic_0001>
module attributes {stable_mosaic.version = 11 : i64} {
  func.func @_tag_pool_kernel(%arg0: memref<8x4x128xf32, #tpu.memory_space<vmem>>, %arg1: memref<8x4xf32, #tpu.memory_space<vmem>>, %arg2: memref<8x128xf32, #tpu.memory_space<vmem>>) attributes {dimension_semantics = [], scalar_prefetch = 0 : i64, scratch_operands = 0 : i64, tpu.core_type = #tpu.core_type<tc>} {
    %c0 = arith.constant 0 : index
    %c0_0 = arith.constant 0 : index
    %c0_1 = arith.constant 0 : index
    %0 = vector.load %arg0[%c0, %c0_0, %c0_1] : memref<8x4x128xf32, #tpu.memory_space<vmem>>, vector<8x4x128xf32>
    %c0_2 = arith.constant 0 : index
    %c0_3 = arith.constant 0 : index
    %1 = vector.load %arg1[%c0_2, %c0_3] : memref<8x4xf32, #tpu.memory_space<vmem>>, vector<8x4xf32>
    %2 = vector.shape_cast %1 : vector<8x4xf32> to vector<8x4x1xf32>
    %3 = vector.broadcast %2 : vector<8x4x1xf32> to vector<8x4x128xf32>
    %4 = arith.mulf %0, %3 : vector<8x4x128xf32>
    %cst = arith.constant dense<0.000000e+00> : vector<8x128xf32>
    %5 = vector.multi_reduction <add>, %4, %cst [1] : vector<8x4x128xf32> to vector<8x128xf32>
    %cst_4 = arith.constant dense<0.000000e+00> : vector<8xf32>
    %6 = vector.multi_reduction <add>, %1, %cst_4 [1] : vector<8x4xf32> to vector<8xf32>
    %7 = vector.shape_cast %6 : vector<8xf32> to vector<8x1xf32>
    %8 = vector.broadcast %7 : vector<8x1xf32> to vector<8x128xf32>
    %9 = arith.divf %5, %8 : vector<8x128xf32>
    %c0_5 = arith.constant 0 : index
    %c0_6 = arith.constant 0 : index
    %10 = vector.load %arg2[%c0_5, %c0_6] : memref<8x128xf32, #tpu.memory_space<vmem>>, vector<8x128xf32>
    tpu.vector_store %arg2[%c0_5, %c0_6], %9 {strides = array<i32>} : memref<8x128xf32, #tpu.memory_space<vmem>>, vector<8x128xf32>,
    return
  }
}

</mosaic_0001>

<bundles_post_ra>
// kernel: tpu_custom_call.1
= control target key start
LH: loop header
LB: loop body
LE: loop exit
PB: predicated region body
PF: predicated region fallthrough
CT: control target
= control target key end

     0   :  { %7 = vsyncpa [#allocation3], 0  ;;  %s360_s0 = inlined_call_operand.hbm [shape: f32[8,4,128], index: 0, kind: input, shape index: {}]   ;;  %s361_s1 = inlined_call_operand.vmem [shape: f32[8,4], index: 1, kind: input, shape index: {}]   ;;  %s362_s2 = inlined_call_operand.hbm [shape: f32[8,128], index: 2, kind: output, shape index: {}]  }
   0x1   :  { %8 = vsyncpa [#allocation4], 0  ;;  %s306_s9 = smov [#allocation2]   ;;  %s258_s13 = scalar_lea.hbm %s360_s0, 512 }
   0x2   :  { %s14_s10 = sshll.u32 %s306_s9, 4  ;;  %p259_p0 = scmp.ne.s32.totalorder %s360_s0, %s258_s13  ;;  %s15_s10 = int_to_ptr.vmem [resolvable:$true] %s14_s10 }
   0x3   :  { %p262_p1 = scmp.lt.u32.totalorder %s258_s13, %s360_s0 }
   0x5   :  { %p264_p2 = pnand %p262_p1, %p259_p0 }
   0x7   :  { %267 = shalt.err (!%p264_p2)
}
   0x8   :  { %s268_s18 = scalar_lea.vmem %s15_s10, 512  ;;  %p273_p4 = scmp.lt.s32.totalorder %s15_s10, %s15_s10 }
   0x9   :  { %p269_p3 = scmp.ne.s32.totalorder %s15_s10, %s268_s18  ;;  %p274_p5 = scmp.lt.s32.totalorder %s268_s18, %s268_s18 }
   0xb   :  { %p275_p6 = por %p274_p5, %p273_p4 }
   0xd   :  { %p276_p7 = pnand %p275_p6, %p269_p3 }
   0xf   :  { %279 = shalt.err (!%p276_p7)
}
  0x10   :  { %s307_s19 = smov 64   ;;  %s308_s20 = smov 4  }
  0x11   :  { %20 = dma.hbm_to_vmem [thread:$0]  %s360_s0, 512, %s15_s10, [#allocation3], %s307_s19, %s307_s19, %s308_s20  }
  0x12   :  { %302 = dma.done.wait [#allocation3], 512  }
  0x13   :  { %303 = vsyncadd [#allocation3], 4294966784  ;;  %v35_v0 = vlaneseq  ;;  %vm156_vm0 = vcmask 31744   ;;  %v34_v4 = vld [vmem:[%s361_s1] sm:$0xff]  ;;  %v28_v23 = vld [vmem:[#allocation2 + $0x8] sm:$0xf] }
  0x14   :  { %v157_v5 = vsel %vm156_vm0, %v34_v4, 0.0  ;;  %v26_v25 = vld [vmem:[#allocation2] sm:$0xf]  ;;  %v29_v27 = vld [vmem:[#allocation2 + $0xc] sm:$0xf]  ;;  %vm99_vm1 = vcmask 1043456  }
  0x15   :  { %v36_v1 = vshrl.u32 %v35_v0, 7  ;;  %158 = vadd.xlane.f32.xlu0 %v157_v5  ;;  %v30_v28 = vld [vmem:[#allocation2 + $0x10] sm:$0xf]  ;;  %v31_v31 = vld [vmem:[#allocation2 + $0x14] sm:$0xf]  ;;  %vm201_vm2 = vcmask 1041409  }
  0x16   :  { %v32_v35 = vld [vmem:[#allocation2 + $0x18] sm:$0xf]  ;;  %v33_v43 = vld [vmem:[#allocation2 + $0x1c] sm:$0xf]  ;;  %v27_v62 = vld [vmem:[#allocation2 + $0x4] sm:$0xf] }
  0x17   :  { %v51_v2 = vsub.s32 2, %v36_v1  ;;  %v37_v3 = vsub.s32 0, %v36_v1  ;;  %v58_v8 = vsub.s32 3, %v36_v1  ;;  %v65_v10 = vsub.s32 4, %v36_v1  ;;  %s309_s0 = smov [#allocation5]  }
  0x18   :  { %v72_v12 = vsub.s32 5, %v36_v1  ;;  %v79_v14 = vsub.s32 6, %v36_v1  ;;  %v44_v15 = vsub.s32 1, %v36_v1  ;;  %v86_v17 = vsub.s32 7, %v36_v1  ;;  %s229_s1 = sshll.u32 %s309_s0, 4  ;;  %s230_s1 = int_to_ptr.vmem [resolvable:$true] %s229_s1 }
  0x19   :  { %v52_v6 = vrot.slane %v34_v4, %v51_v2  ;;  %v38_v7 = vrot.slane %v34_v4, %v37_v3  ;;  %v59_v9 = vrot.slane %v34_v4, %v58_v8  ;;  %v66_v11 = vrot.slane %v34_v4, %v65_v10  ;;  %s280_s25 = scalar_lea.vmem %s230_s1, 128  ;;  %p285_p9 = scmp.lt.s32.totalorder %s230_s1, %s230_s1 }
  0x1a   :  { %v73_v13 = vrot.slane %v34_v4, %v72_v12  ;;  %v80_v16 = vrot.slane %v34_v4, %v79_v14  ;;  %v45_v18 = vrot.slane %v34_v4, %v44_v15  ;;  %v87_v19 = vrot.slane %v34_v4, %v86_v17  ;;  %p281_p8 = scmp.ne.s32.totalorder %s230_s1, %s280_s25  ;;  %p286_p10 = scmp.lt.s32.totalorder %s280_s25, %s280_s25 }
  0x1b   :  { %54 = vbcast.lane.b32.xlu1 %v52_v6, 256  ;;  %vm204_vm3 = vcmask 1042434   ;;  %vm207_vm4 = vcmask 1043459   ;;  %vm210_vm5 = vcmask 1044484   ;;  %vm213_vm6 = vcmask 1045509  }
  0x1c   :  { %vm216_vm7 = vcmask 1046534   ;;  %vm219_vm8 = vcmask 1047559   ;;  %p287_p11 = por %p286_p10, %p285_p9 }
  0x1e   :  { %p288_p12 = pnand %p287_p11, %p281_p8 }
  0x1f   :  { %40 = vbcast.lane.b32.xlu1 %v38_v7, 256 }
  0x23   :  { %61 = vbcast.lane.b32.xlu1 %v59_v9, 256 }
  0x27   :  { %68 = vbcast.lane.b32.xlu1 %v66_v11, 256 }
  0x2b   :  { %75 = vbcast.lane.b32.xlu1 %v73_v13, 256  ;;  %47 = vbcast.lane.b32.xlu0 %v45_v18, 256 }
  0x2f   :  { %82 = vbcast.lane.b32.xlu1 %v80_v16, 256 }
  0x33   :  { %89 = vbcast.lane.b32.xlu1 %v87_v19, 256 }
  0x8d   :  { %v55_v20 = vpop.permute.xlu1 %54 }
  0x8e   :  { %v93_v26 = vmul.f32 %v55_v20, %v28_v23 }
  0x90   :  { %v114_v34 = vsel %vm99_vm1, %v93_v26, 0.0 }
  0x91   :  { %v41_v21 = vpop.permute.xlu1 %40  ;;  %v115_v39 = vrot.slane %v114_v34, 4 }
  0x92   :  { %v91_v29 = vmul.f32 %v41_v21, %v26_v25 }
  0x93   :  { %v116_v50 = vadd.f32 %v115_v39, %v114_v34 }
  0x94   :  { %v100_v37 = vsel %vm99_vm1, %v91_v29, 0.0 }
  0x95   :  { %v62_v22 = vpop.permute.xlu1 %61  ;;  %v101_v44 = vrot.slane %v100_v37, 4  ;;  %v117_v63 = vrot.slane %v116_v50, 2 }
  0x96   :  { %v94_v32 = vmul.f32 %v62_v22, %v29_v27 }
  0x97   :  { %v102_v55 = vadd.f32 %v101_v44, %v100_v37  ;;  %v118_v18 = vadd.f32 %v117_v63, %v116_v50 }
  0x98   :  { %v121_v40 = vsel %vm99_vm1, %v94_v32, 0.0 }
  0x99   :  { %v69_v24 = vpop.permute.xlu1 %68  ;;  %v122_v47 = vrot.slane %v121_v40, 4  ;;  %v103_v6 = vrot.slane %v102_v55, 2  ;;  %v119_v27 = vrot.slane %v118_v18, 1 }
  0x9a   :  { %v95_v33 = vmul.f32 %v69_v24, %v30_v28 }
  0x9b   :  { %v123_v58 = vadd.f32 %v122_v47, %v121_v40  ;;  %v104_v21 = vadd.f32 %v103_v6, %v102_v55  ;;  %v120_v40 = vadd.f32 %v119_v27, %v118_v18 }
  0x9c   :  { %v128_v41 = vsel %vm99_vm1, %v95_v33, 0.0 }
  0x9d   :  { %v76_v30 = vpop.permute.xlu1 %75  ;;  %v129_v48 = vrot.slane %v128_v41, 4  ;;  %v124_v9 = vrot.slane %v123_v58, 2  ;;  %v105_v32 = vrot.slane %v104_v21, 1 }
  0x9e   :  { %v96_v36 = vmul.f32 %v76_v30, %v31_v31 }
  0x9f   :  { %v130_v59 = vadd.f32 %v129_v48, %v128_v41  ;;  %v125_v19 = vadd.f32 %v124_v9, %v123_v58 }
  0xa0   :  { %v135_v45 = vsel %vm99_vm1, %v96_v36, 0.0 }
  0xa1   :  { %v83_v38 = vpop.permute.xlu1 %82  ;;  %v136_v53 = vrot.slane %v135_v45, 4  ;;  %v131_v10 = vrot.slane %v130_v59, 2  ;;  %v126_v29 = vrot.slane %v125_v19, 1 }
  0xa2   :  { %v97_v42 = vmul.f32 %v83_v38, %v32_v35  ;;  %v159_v54 = vpop.xlane.xlu0 %158 }
  0xa3   :  { %v161_v57 = vrot.slane %v159_v54, 1  ;;  %v162_v61 = vrot.slane %v159_v54, 2  ;;  %v163_v1 = vrot.slane %v159_v54, 3  ;;  %v137_v2 = vadd.f32 %v136_v53, %v135_v45 }
  0xa4   :  { %v142_v46 = vsel %vm99_vm1, %v97_v42, 0.0  ;;  %v164_v4 = vrot.slane %v159_v54, 4  ;;  %242 = vrcp.f32 %v159_v54  ;;  %v165_v7 = vrot.slane %v159_v54, 5 }
  0xa5   :  { %v90_v49 = vpop.permute.xlu1 %89  ;;  %v143_v51 = vrot.slane %v142_v46, 4  ;;  %244 = vrcp.f32 %v161_v57  ;;  %v166_v11 = vrot.slane %v159_v54, 6  ;;  %v167_v14 = vrot.slane %v159_v54, 7 }
  0xa6   :  { %v98_v52 = vmul.f32 %v90_v49, %v33_v43  ;;  %v48_v5 = vpop.permute.xlu0 %47  ;;  %246 = vrcp.f32 %v162_v61  ;;  %v138_v15 = vrot.slane %v137_v2, 2  ;;  %v132_v22 = vadd.f32 %v131_v10, %v130_v59 }
  0xa7   :  { %v144_v0 = vadd.f32 %v143_v51, %v142_v46  ;;  %v92_v8 = vmul.f32 %v48_v5, %v27_v62  ;;  %248 = vrcp.f32 %v163_v1  ;;  %v127_v42 = vadd.f32 %v126_v29, %v125_v19 }
  0xa8   :  { %v149_v56 = vsel %vm99_vm1, %v98_v52, 0.0  ;;  %250 = vrcp.f32 %v164_v4  ;;  %v139_v24 = vadd.f32 %v138_v15, %v137_v2  ;;  %v133_v33 = vrot.slane %v132_v22, 1 }
  0xa9   :  { %v150_v60 = vrot.slane %v149_v56, 4  ;;  %v145_v12 = vrot.slane %v144_v0, 2  ;;  %v107_v13 = vsel %vm99_vm1, %v92_v8, 0.0  ;;  %252 = vrcp.f32 %v165_v7 }
  0xaa   :  { %v108_v17 = vrot.slane %v107_v13, 4  ;;  %254 = vrcp.f32 %v166_v11  ;;  %v140_v36 = vrot.slane %v139_v24, 1  ;;  %v106_v45 = vadd.f32 %v105_v32, %v104_v21 }
  0xab   :  { %v151_v3 = vadd.f32 %v150_v60, %v149_v56  ;;  %v146_v23 = vadd.f32 %v145_v12, %v144_v0  ;;  %256 = vrcp.f32 %v167_v14  ;;  %v134_v46 = vadd.f32 %v133_v33, %v132_v22 }
  0xac   :  { %v109_v20 = vadd.f32 %v108_v17, %v107_v13  ;;  %v141_v50 = vadd.f32 %v140_v36, %v139_v24 }
  0xad   :  { %v152_v16 = vrot.slane %v151_v3, 2  ;;  %v147_v34 = vrot.slane %v146_v23, 1 }
  0xae   :  { %v110_v26 = vrot.slane %v109_v20, 2  ;;  %v243_v28 = vpop.eup %242 }
  0xaf   :  { %v153_v25 = vadd.f32 %v152_v16, %v151_v3  ;;  %v245_v31 = vpop.eup %244  ;;  %v148_v47 = vadd.f32 %v147_v34, %v146_v23  ;;  %v177_v56 = vmul.f32 %v243_v28, %v106_v45 }
  0xb0   :  { %v111_v30 = vadd.f32 %v110_v26, %v109_v20  ;;  %v247_v35 = vpop.eup %246 }
  0xb1   :  { %v154_v37 = vrot.slane %v153_v25, 1  ;;  %v249_v39 = vpop.eup %248  ;;  %v181_v48 = vmul.f32 %v247_v35, %v120_v40 }
  0xb2   :  { %v112_v38 = vrot.slane %v111_v30, 1  ;;  %v251_v41 = vpop.eup %250  ;;  %v183_v53 = vmul.f32 %v249_v39, %v127_v42 }
  0xb3   :  { %v253_v44 = vpop.eup %252  ;;  %v155_v51 = vadd.f32 %v154_v37, %v153_v25  ;;  %v185_v55 = vmul.f32 %v251_v41, %v134_v46  ;;  %v203_v60 = vrot.slane %v181_v48, 6 }
  0xb4   :  { %v113_v43 = vadd.f32 %v112_v38, %v111_v30  ;;  %v255_v49 = vpop.eup %254  ;;  %v187_v58 = vmul.f32 %v253_v44, %v141_v50  ;;  %v206_v63 = vrot.slane %v183_v53, 5 }
  0xb5   :  { %v257_v54 = vpop.eup %256  ;;  %v189_v59 = vmul.f32 %v255_v49, %v148_v47  ;;  %v209_v1 = vrot.slane %v185_v55, 4 }
  0xb6   :  { %v179_v52 = vmul.f32 %v245_v31, %v113_v43  ;;  %v191_v62 = vmul.f32 %v257_v54, %v155_v51  ;;  %v212_v3 = vrot.slane %v187_v58, 3 }
  0xb7   :  { %v215_v5 = vrot.slane %v189_v59, 2 }
  0xb8   :  { %v200_v57 = vrot.slane %v179_v52, 7  ;;  %v218_v7 = vrot.slane %v191_v62, 1 }
  0xba   :  { %v202_v61 = vsel %vm201_vm2, %v200_v57, %v177_v56 }
  0xbb   :  { %v205_v0 = vsel %vm204_vm3, %v203_v60, %v202_v61 }
  0xbc   :  { %v208_v2 = vsel %vm207_vm4, %v206_v63, %v205_v0 }
  0xbd   :  { %v211_v4 = vsel %vm210_vm5, %v209_v1, %v208_v2 }
  0xbe   :  { %v214_v6 = vsel %vm213_vm6, %v212_v3, %v211_v4 }
  0xbf   :  { %v217_v8 = vsel %vm216_vm7, %v215_v5, %v214_v6 }
  0xc0   :  { %v220_v9 = vsel %vm219_vm8, %v218_v7, %v217_v8 }
  0xc1   :  { %222 = vst [vmem:[#allocation5] sm:$0xff] %v220_v9 }
  0xc2   :  { %291 = shalt.err (!%p288_p12)
}
  0xc3   :  { %s292_s28 = scalar_lea.hbm %s362_s2, 128 }
  0xc4   :  { %p293_p13 = scmp.ne.s32.totalorder %s362_s2, %s292_s28  ;;  %p296_p0 = scmp.lt.u32.totalorder %s292_s28, %s362_s2 }
  0xc6   :  { %p298_p1 = pnand %p296_p0, %p293_p13 }
  0xc8   :  { %301 = shalt.err (!%p298_p1)
}
  0xc9   :  { %232 = dma.vmem_to_hbm [thread:$0]  %s230_s1, 128, %s362_s2, [#allocation4]  }
  0xca   :  { %304 = dma.done.wait [#allocation4], 128  }
  0xcb   :  { %305 = vsyncadd [#allocation4], 4294967168 }
  0xcc   :  { %236 = vsyncpa [#allocation3], 1 }
  0xcd   :  { %237 = vsyncpa [#allocation4], 1 }

</bundles_post_ra>
